<compile_context>
chip_gen: v5e
topology: v5e:2x2
jax: 0.10.0
libtpu: 0.0.40
codegen_flags: <defaults>
</compile_context>

<pallas_src>
import jax
import jax.numpy as jnp
from jax.experimental import pallas as pl
from jax.experimental.pallas import tpu as pltpu

IN_FEATURES = 64
OUT_FEATURES = 5
MAX_TB = 8192  # rows per grid step; 2 MiB of f32 x per step


def _round_up(n, m):
    return ((n + m - 1) // m) * m


def _pick_tb(batch):
    # One maximal block when the whole batch fits (single-TC chips gain
    # nothing from splitting); otherwise steps of MAX_TB rows, sharded across
    # TensorCores on v7x via the "parallel" grid axis.
    return max(8, min(MAX_TB, _round_up(batch, 8)))


def _linear_relu_logsoftmax_kernel(x_ref, w_ref, b_ref, o_ref):
    # x_ref: (TB, 64) f32, w_ref: (5, 64) f32 (PyTorch layout),
    # b_ref: (1, 5) f32, o_ref: (TB, 5) f32
    # x @ W.T on the MXU with f32 accumulation (transpose folded in-kernel;
    # the (5, 64) weight is tiny and VMEM-resident).
    y = jnp.dot(x_ref[...], w_ref[...].T, preferred_element_type=jnp.float32)
    y = y + b_ref[...]          # bias broadcast

    # ReLU
    y = jnp.maximum(y, 0.0)

    # log_softmax over last dim (numerically stable), all f32.
    # Note: a partial last block (B % tb != 0) computes exp() on padded rows;
    # those rows are discarded by the output writeback, so results are correct.
    m = jnp.max(y, axis=-1, keepdims=True)
    z = y - m
    lse = jnp.log(jnp.sum(jnp.exp(z), axis=-1, keepdims=True))
    o_ref[...] = (z - lse).astype(o_ref.dtype)


def primary_model_forward(x, weight, bias):
    """x: (B, 64) f32; weight: (5, 64) (PyTorch layout); bias: (5,)."""
    B = x.shape[0]
    assert x.shape[1] == IN_FEATURES

    x = x.astype(jnp.float32)
    w = weight.astype(jnp.float32)                 # (5, 64), no transpose
    b2 = bias.reshape(1, OUT_FEATURES).astype(jnp.float32)

    tb = _pick_tb(B)
    grid = (pl.cdiv(B, tb),)

    return pl.pallas_call(
        _linear_relu_logsoftmax_kernel,
        out_shape=jax.ShapeDtypeStruct((B, OUT_FEATURES), jnp.float32),
        grid_spec=pltpu.PrefetchScalarGridSpec(
            num_scalar_prefetch=0,
            grid=grid,
            in_specs=[
                pl.BlockSpec((tb, IN_FEATURES), lambda i: (i, 0)),
                # Constant block indices -> W and b stay resident in VMEM.
                pl.BlockSpec((OUT_FEATURES, IN_FEATURES), lambda i: (0, 0)),
                pl.BlockSpec((1, OUT_FEATURES), lambda i: (0, 0)),
            ],
            out_specs=pl.BlockSpec((tb, OUT_FEATURES), lambda i: (i, 0)),
        ),
        compiler_params=pltpu.CompilerParams(
            dimension_semantics=("parallel",),
            # ~12 MiB peak at tb=8192 (double-buffered x + lane-padded out);
            # 32 MiB is safe on v5e/v6e (128 MiB physical) and v7x (64 MiB).
            vmem_limit_bytes=32 * 1024 * 1024,
        ),
    )(x, w, b2)


if __name__ == "__main__":
    key = jax.random.PRNGKey(0)
    k_x, k_w, k_b = jax.random.split(key, 3)

    B = 16  # small deterministic batch
    # Deterministic synthetic parameters (PyTorch Linear default init range).
    bound = 1.0 / jnp.sqrt(IN_FEATURES)
    weight = jax.random.uniform(
        k_w, (OUT_FEATURES, IN_FEATURES), jnp.float32, -bound, bound)
    bias = jax.random.uniform(
        k_b, (OUT_FEATURES,), jnp.float32, -bound, bound)

    x = jax.random.normal(k_x, (B, IN_FEATURES), jnp.float32)

    out = primary_model_forward(x, weight, bias)
    jax.block_until_ready(out)

    # Pure-JAX reference of the forward pass.
    y_ref = jnp.maximum(x @ weight.T + bias, 0.0)
    ref = jax.nn.log_softmax(y_ref, axis=-1)

    assert out.shape == (B, OUT_FEATURES)
    assert jnp.allclose(out, ref, atol=5e-3, rtol=5e-3)

    print("KERNEL_OK")
</pallas_src>

<mosaic_0001>
module attributes {stable_mosaic.version = 11 : i64} {
  func.func @_linear_relu_logsoftmax_kernel(%arg0: i32, %arg1: memref<16x64xf32, #tpu.memory_space<vmem>>, %arg2: memref<5x64xf32, #tpu.memory_space<vmem>>, %arg3: memref<1x5xf32, #tpu.memory_space<vmem>>, %arg4: memref<16x5xf32, #tpu.memory_space<vmem>>) attributes {dimension_semantics = [#tpu.dimension_semantics<parallel>], iteration_bounds = array<i64: 1>, scalar_prefetch = 0 : i64, scratch_operands = 0 : i64, tpu.core_type = #tpu.core_type<tc>, window_params = [{transform_indices = @transform_0, window_bounds = array<i64: 16, 64>}, {pipeline_mode = #tpu.pipeline_mode<synchronous>, transform_indices = @transform_1, window_bounds = array<i64: 5, 64>}, {pipeline_mode = #tpu.pipeline_mode<synchronous>, transform_indices = @transform_2, window_bounds = array<i64: 1, 5>}, {transform_indices = @transform_3, window_bounds = array<i64: 16, 5>}]} {
    %c0 = arith.constant 0 : index
    %c0_0 = arith.constant 0 : index
    %0 = vector.load %arg1[%c0, %c0_0] : memref<16x64xf32, #tpu.memory_space<vmem>>, vector<16x64xf32>
    %c0_1 = arith.constant 0 : index
    %c0_2 = arith.constant 0 : index
    %1 = vector.load %arg2[%c0_1, %c0_2] : memref<5x64xf32, #tpu.memory_space<vmem>>, vector<5x64xf32>
    %2 = tpu.transpose %1, [1, 0] : vector<5x64xf32> -> vector<64x5xf32>
    %cst = arith.constant dense<0.000000e+00> : vector<16x5xf32>
    %3 = tpu.matmul %0, %2, %cst {dimension_numbers = #tpu.dot_dimension_numbers<[1], [0], [0], [1], [0, 0, 1, 1], [], []>} : vector<16x64xf32>, vector<64x5xf32>, vector<16x5xf32> -> vector<16x5xf32>
    %c0_3 = arith.constant 0 : index
    %c0_4 = arith.constant 0 : index
    %4 = vector.load %arg3[%c0_3, %c0_4] : memref<1x5xf32, #tpu.memory_space<vmem>>, vector<1x5xf32>
    %5 = vector.broadcast %4 : vector<1x5xf32> to vector<16x5xf32>
    %6 = arith.addf %3, %5 : vector<16x5xf32>
    %cst_5 = arith.constant 0.000000e+00 : f32
    %7 = vector.broadcast %cst_5 : f32 to vector<16x5xf32>
    %8 = arith.maximumf %6, %7 : vector<16x5xf32>
    %cst_6 = arith.constant dense<0xFF800000> : vector<16xf32>
    %9 = vector.multi_reduction <maximumf>, %8, %cst_6 [1] : vector<16x5xf32> to vector<16xf32>
    %10 = vector.shape_cast %9 : vector<16xf32> to vector<16x1xf32>
    %11 = vector.broadcast %10 : vector<16x1xf32> to vector<16x5xf32>
    %12 = arith.subf %8, %11 : vector<16x5xf32>
    %13 = math.exp %12 : vector<16x5xf32>
    %cst_7 = arith.constant dense<0.000000e+00> : vector<16xf32>
    %14 = vector.multi_reduction <add>, %13, %cst_7 [1] : vector<16x5xf32> to vector<16xf32>
    %15 = vector.shape_cast %14 : vector<16xf32> to vector<16x1xf32>
    %16 = math.log %15 : vector<16x1xf32>
    %17 = vector.broadcast %16 : vector<16x1xf32> to vector<16x5xf32>
    %18 = arith.subf %12, %17 : vector<16x5xf32>
    %c0_8 = arith.constant 0 : index
    %c0_9 = arith.constant 0 : index
    %19 = vector.load %arg4[%c0_8, %c0_9] : memref<16x5xf32, #tpu.memory_space<vmem>>, vector<16x5xf32>
    tpu.vector_store %arg4[%c0_8, %c0_9], %18 {strides = array<i32>} : memref<16x5xf32, #tpu.memory_space<vmem>>, vector<16x5xf32>,
    return
  }
  func.func @transform_0(%arg0: i32) -> (i32, i32) {
    %c0_i32 = arith.constant 0 : i32
    %c0_i32_0 = arith.constant 0 : i32
    return %arg0, %c0_i32 : i32, i32
  }
  func.func @transform_1(%arg0: i32) -> (i32, i32) {
    %c0_i32 = arith.constant 0 : i32
    %c0_i32_0 = arith.constant 0 : i32
    %c0_i32_1 = arith.constant 0 : i32
    return %c0_i32, %c0_i32_0 : i32, i32
  }
  func.func @transform_2(%arg0: i32) -> (i32, i32) {
    %c0_i32 = arith.constant 0 : i32
    %c0_i32_0 = arith.constant 0 : i32
    %c0_i32_1 = arith.constant 0 : i32
    return %c0_i32, %c0_i32_0 : i32, i32
  }
  func.func @transform_3(%arg0: i32) -> (i32, i32) {
    %c0_i32 = arith.constant 0 : i32
    %c0_i32_0 = arith.constant 0 : i32
    return %arg0, %c0_i32 : i32, i32
  }
}

</mosaic_0001>

<bundles_post_ra>
// kernel: tpu_custom_call.1
= control target key start
LH: loop header
LB: loop body
LE: loop exit
PB: predicated region body
PF: predicated region fallthrough
CT: control target
= control target key end

     0   :  { %8 = vsyncpa [#allocation3], 0  ;;  %s233_s0 = inlined_call_operand.hbm [shape: f32[16,64], index: 0, kind: input, shape index: {}]   ;;  %s234_s1 = inlined_call_operand.hbm [shape: f32[5,64], index: 1, kind: input, shape index: {}]   ;;  %s235_s2 = inlined_call_operand.vmem [shape: f32[1,5], index: 2, kind: input, shape index: {}]   ;;  %s236_s3 = inlined_call_operand.vmem [shape: f32[16,5], index: 3, kind: output, shape index: {}]  }
   0x1   :  { %s14_s14 = sshll.u32 %s233_s0, 4  ;;  %s15_s14 = int_to_ptr.hbm [resolvable:$true] %s14_s14 }
   0x2   :  { %9 = vsyncpa [#allocation5], 0  ;;  %s188_s15 = smov [#allocation2]   ;;  %s28_s19 = sshll.u32 %s234_s1, 4  ;;  %s29_s19 = int_to_ptr.hbm [resolvable:$true] %s28_s19 }
   0x3   :  { %s16_s16 = sshll.u32 %s188_s15, 4  ;;  %s189_s20 = smov 128   ;;  %s17_s16 = int_to_ptr.vmem [resolvable:$true] %s16_s16 }
   0x4   :  { %s190_s21 = smov 8   ;;  %s191_s22 = smov [#allocation4]  }
   0x5   :  { %22 = dma.hbm_to_vmem [thread:$0]  %s15_s14, 256, %s17_s16, [#allocation3], %s189_s20, %s189_s20, %s190_s21  }
   0x6   :  { %s30_s23 = sshll.u32 %s191_s22, 4  ;;  %s31_s23 = int_to_ptr.vmem [resolvable:$true] %s30_s23 }
   0x7   :  { %33 = dma.hbm_to_vmem [thread:$0]  %s29_s19, 128, %s31_s23, [#allocation5]  }
   0x8   :  { %184 = dma.done.wait [#allocation3], 256  }
   0x9   :  { %185 = vsyncadd [#allocation3], 4294967040 }
   0xa   :  { %186 = dma.done.wait [#allocation5], 128  }
   0xb   :  { %187 = vsyncadd [#allocation5], 4294967168  ;;  %vm51_vm0 = vcmask 523264   ;;  %v46_v0 = vld [vmem:[#allocation4] sm:$0x1f]  ;;  %v44_v1 = vld [vmem:[#allocation2] sm:$0xff] }
   0xc   :  { %119 = vmatpush.xpose.msk.msra.mxu0 %vm51_vm0, %v46_v0  ;;  %122 = vmatpush.xpose.msk.msra.mxu1 %vm51_vm0, %v46_v0  ;;  %v45_v2 = vld [vmem:[#allocation2 + $0x8] sm:$0xff]  ;;  %v127_v3 = vld [vmem:[%s235_s2] ss:$0 sm:$0xff]  ;;  %vm86_vm1 = vcmask 39936  }
   0xf   :  { %120 = vmatmul.msk.f32.vlgmr.msra.gmra.mxu0 %vm51_vm0, %v44_v1  ;;  %121 = vmatmul.msk.f32.vlgmr.msra.gmra.mxu1 %vm51_vm0, %v45_v2 }
  0x8c   :  { %v78_v4 = vpop.f32.mrf.mxu0  ;;  %v81_v5 = vpop.f32.mrf.mxu1 }
  0x8d   :  { %v79_v6 = vadd.f32 %v127_v3, %v78_v4  ;;  %v82_v8 = vadd.f32 %v127_v3, %v81_v5 }
  0x8f   :  { %v84_v7 = vmax.f32 %v79_v6, 0.0  ;;  %v85_v10 = vmax.f32 %v82_v8, 0.0 }
  0x91   :  { %v87_v9 = vsel %vm86_vm1, %v84_v7, -inf  ;;  %v90_v11 = vsel %vm86_vm1, %v85_v10, -inf }
  0x92   :  { %88 = vmax.xlane.f32.xlu0 %v87_v9 }
  0x9a   :  { %91 = vmax.xlane.f32.xlu0 %v90_v11 }
 0x105   :  { %v89_v12 = vpop.xlane.xlu0 %88 }
 0x106   :  { %v93_v13 = vsub.f32 %v84_v7, %v89_v12 }
 0x108   :  { %v95_v14 = vmul.f32 1.442695, %v93_v13 }
 0x10a   :  { %128 = vpow2.f32 %v95_v14 }
 0x10d   :  { %v92_v15 = vpop.xlane.xlu0 %91 }
 0x10e   :  { %v94_v16 = vsub.f32 %v85_v10, %v92_v15 }
 0x110   :  { %v129_v17 = vpop.eup %128  ;;  %v97_v18 = vmul.f32 1.442695, %v94_v16 }
 0x111   :  { %v99_v19 = vsel %vm86_vm1, %v129_v17, 0.0 }
 0x112   :  { %130 = vpow2.f32 %v97_v18  ;;  %100 = vadd.xlane.f32.xlu1 %v99_v19 }
 0x118   :  { %v131_v20 = vpop.eup %130 }
 0x119   :  { %v102_v21 = vsel %vm86_vm1, %v131_v20, 0.0 }
 0x11a   :  { %103 = vadd.xlane.f32.xlu1 %v102_v21 }
 0x185   :  { %v101_v22 = vpop.xlane.xlu1 %100 }
 0x186   :  { %132 = vlog2.f32 %v101_v22 }
 0x18c   :  { %v133_v23 = vpop.eup %132 }
 0x18d   :  { %v106_v24 = vmul.f32 0.6931472, %v133_v23  ;;  %v104_v25 = vpop.xlane.xlu1 %103 }
 0x18e   :  { %134 = vlog2.f32 %v104_v25 }
 0x18f   :  { %v109_v26 = vsub.f32 %v93_v13, %v106_v24 }
 0x191   :  { %111 = vst.msk [vmem:[%s236_s3] sm:$0xff] %vm86_vm1, %v109_v26 }
 0x194   :  { %v135_v27 = vpop.eup %134 }
 0x195   :  { %v108_v28 = vmul.f32 0.6931472, %v135_v27 }
 0x197   :  { %v110_v29 = vsub.f32 %v94_v16, %v108_v28 }
 0x199   :  { %112 = vst.msk [vmem:[%s236_s3 + $0x8] sm:$0xff] %vm86_vm1, %v110_v29 }
 0x19a   :  { %117 = vsyncpa [#allocation3], 1 }
 0x19b   :  { %118 = vsyncpa [#allocation5], 1 }

</bundles_post_ra>
